<compile_context>
chip_gen: v7x
topology: tpu7x:2x2x1
jax: 0.10.0
libtpu: 0.0.40
codegen_flags: <defaults>
</compile_context>

<pallas_src>
import jax
import jax.numpy as jnp
from jax.experimental import pallas as pl
from jax.experimental.pallas import tpu as pltpu

_CRITIC_WEIGHT = 0.5     # Critic(weight=0.5, power=1.0) -> no pow needed
_TEMPERATURE = 0.1

_TAN_PI_8 = 0.4142135623730951
_PI = 3.141592653589793
_PI_2 = 1.5707963267948966
_PI_4 = 0.7853981633974483


def _vpu_atan2(y, x):
    """atan2(y, x) from basic elementwise ops (Cephes atanf polynomial).

    Avoids depending on a Mosaic lowering rule for lax.atan2_p; max error vs.
    libm is ~2e-7 rad.  atan2(0, 0) -> 0, matching torch.
    """
    ax = jnp.abs(x)
    ay = jnp.abs(y)
    hi = jnp.maximum(ax, ay)
    lo = jnp.minimum(ax, ay)
    q = lo / jnp.where(hi > 0.0, hi, 1.0)                # ratio in [0, 1]
    # Second range reduction so the polynomial argument is <= tan(pi/8).
    red = q > _TAN_PI_8
    qr = jnp.where(red, (q - 1.0) / (q + 1.0), q)
    s = qr * qr
    p = ((((8.05374449538e-2 * s - 1.38776856032e-1) * s
           + 1.99777106478e-1) * s - 3.33329491539e-1) * s * qr + qr)
    phi = jnp.where(red, p + _PI_4, p)                   # atan(lo/hi) in [0, pi/4+]
    phi = jnp.where(ay > ax, _PI_2 - phi, phi)           # atan(ay/ax) in [0, pi/2]
    phi = jnp.where(x < 0.0, _PI - phi, phi)             # quadrant fixup
    return jnp.where(y < 0.0, -phi, phi)


def _make_score_kernel(k: int, inv_temperature: float, critic_weight: float):
    """Fused critic + weighting kernel over the lane-dense last-state slab [3, K]."""
    needs_mask = (k % 128) != 0

    def kernel(last_ref, goal_ref, cost_ref, w_ref):
        last = last_ref[...]                             # [3, K] f32 (VMEM)
        gx = goal_ref[0]                                 # SMEM scalars (goal x, y)
        gy = goal_ref[1]

        dx = last[0:1, :] - gx                           # [1, K]
        dy = last[1:2, :] - gy
        yaw = last[2:3, :]

        # AlignToPath critic: heading-to-goal error at the final timestep.
        dyaw = _vpu_atan2(dy, dx) - yaw                  # [1, K]

        if needs_mask:
            # K not a lane multiple: padded lanes hold garbage, force them to the
            # reduction identities before the global min/max.
            lane = jax.lax.broadcasted_iota(jnp.int32, (1, k), 1)
            valid = lane < k
            dmin = jnp.min(jnp.where(valid, dyaw, jnp.inf))
            dmax = jnp.max(jnp.where(valid, dyaw, -jnp.inf))
        else:
            dmin = jnp.min(dyaw)
            dmax = jnp.max(dyaw)

        # One scalar divide (critic weight folded in) instead of K per-lane divides.
        # NOTE: dmax == dmin -> Inf/NaN, exactly like the PyTorch reference.
        scale = critic_weight / (dmax - dmin)
        cost = (dyaw - dmin) * scale                     # [1, K] total critic cost
        cost_ref[...] = cost                             # (sum over registered critics)

        # MPPI.evaluate_trajectories, fused so `cost` never round-trips via HBM:
        # weights = exp(-(1/temperature) * (cost - min(cost)))
        if needs_mask:
            cmin = jnp.min(jnp.where(valid, cost, jnp.inf))
        else:
            cmin = jnp.min(cost)
        w_ref[...] = jnp.exp((cmin - cost) * inv_temperature)

    return kernel


def _score_last_slab(traj_tm: jax.Array, goal_xy: jax.Array,
                     temperature: float, critic_weight: float):
    """traj_tm: [T, 3, K] f32 (time-major); goal_xy: [2] f32 -> (cost[K], weights[K])."""
    t, s, k = traj_tm.shape
    assert s == 3
    # TODO(synk): if K ever exceeds ~8k rollouts, tile K with a 1-D "parallel" grid
    # (two-pass min/max with a partial-reduction scratch) to keep the live (1, K)
    # temporaries inside the 64-vreg file and use both v7x TensorCores.
    cost, weights = pl.pallas_call(
        _make_score_kernel(k, 1.0 / temperature, critic_weight),
        grid=(1,),
        in_specs=[
            # The "last timestep slice" lives in the index_map: only the final
            # [3, K] slab is DMA'd from HBM.  3 and K equal the full array dims,
            # so the block is exempt from the (8,128) divisibility rule.
            pl.BlockSpec((pl.Squeezed(), 3, k), lambda i: (t - 1, 0, 0)),
            pl.BlockSpec(memory_space=pltpu.MemorySpace.SMEM),   # goal x, y scalars
        ],
        out_specs=(
            pl.BlockSpec((1, k), lambda i: (0, 0)),
            pl.BlockSpec((1, k), lambda i: (0, 0)),
        ),
        out_shape=(
            jax.ShapeDtypeStruct((1, k), jnp.float32),   # per-rollout critic cost
            jax.ShapeDtypeStruct((1, k), jnp.float32),   # per-rollout MPPI weight
        ),
    )(traj_tm, goal_xy)
    # Leading-1 squeeze is free; contract is lane-dense [K] (no [K,1] reshape copy).
    return cost[0], weights[0]


def mppi_rollout_scores_time_major(trajectory_tm, goal_pose, *,
                                   temperature=_TEMPERATURE,
                                   critic_weight=_CRITIC_WEIGHT):
    """Preferred layout: trajectory_tm [T, 3, K] (last step contiguous & lane-dense)."""
    traj = trajectory_tm.astype(jnp.float32)
    goal_xy = goal_pose.astype(jnp.float32)[:2, 0]
    return _score_last_slab(traj, goal_xy, temperature, critic_weight)


def mppi_rollout_scores(trajectory, goal_pose, *,
                        temperature=_TEMPERATURE, critic_weight=_CRITIC_WEIGHT):
    """Module-native layout: trajectory [K, 3, T] (as produced by MPPI.rollout)."""
    k, s, t = trajectory.shape
    assert s == 3
    # TODO(synk): store rollouts time-major ([T, 3, K]) upstream — this strided
    # last-step gather + transpose costs more than the whole kernel.
    last_tm = jnp.transpose(trajectory[:, :, -1].astype(jnp.float32), (1, 0))[None]  # [1, 3, K]
    goal_xy = goal_pose.astype(jnp.float32)[:2, 0]
    return _score_last_slab(last_tm, goal_xy, temperature, critic_weight)


def mppi_update_control(trajectory_tm, goal_pose, noise, current_control,
                        min_control, max_control, *,
                        temperature=_TEMPERATURE, critic_weight=_CRITIC_WEIGHT):
    """evaluate_trajectories -> compute_average_control -> _limit_control.

    Weights come from the fused Pallas kernel; the weighted-noise reduction and
    the clamp are tiny [C, T] XLA ops and stay outside the kernel.
    """
    _, weights = mppi_rollout_scores_time_major(
        trajectory_tm, goal_pose, temperature=temperature, critic_weight=critic_weight)
    weighted_noise = jnp.einsum("k,kct->ct", weights, noise.astype(jnp.float32))
    control = current_control + weighted_noise / jnp.sum(weights)
    return jnp.clip(control, min_control, max_control)


# ----------------------------- pure-JAX references -----------------------------

def _reference_scores(trajectory, goal_pose, temperature, critic_weight):
    """Mirror of the AlignToPath critic + MPPI.evaluate_trajectories."""
    diff = trajectory - goal_pose[None, :, :]
    dyaw = jnp.arctan2(diff[:, 1, -1], diff[:, 0, -1]) - trajectory[:, 2, -1]
    cost = critic_weight * (dyaw - jnp.min(dyaw)) / (jnp.max(dyaw) - jnp.min(dyaw))
    weights = jnp.exp(-(1.0 / temperature) * (cost - jnp.min(cost)))
    return cost, weights


def _reference_control(weights, noise, current_control, min_control, max_control):
    w = weights.reshape(-1, 1, 1)
    weighted = jnp.sum(w * noise, axis=0)
    control = current_control + weighted / jnp.sum(weights)
    return jnp.clip(control, min_control, max_control)


if __name__ == "__main__":
    key = jax.random.PRNGKey(0)
    k_traj, k_goal, k_noise, k_ctrl = jax.random.split(key, 4)

    K, S, C, T = 256, 3, 2, 8         # rollouts, state dims (x,y,yaw), control dims, timesteps
    trajectory = jax.random.normal(k_traj, (K, S, T + 1), dtype=jnp.float32) * 2.0
    goal_pose = jax.random.normal(k_goal, (S, 1), dtype=jnp.float32)
    noise = jax.random.normal(k_noise, (K, C, T), dtype=jnp.float32) * 0.9
    current_control = jax.random.normal(k_ctrl, (C, T), dtype=jnp.float32) * 0.1
    min_control = jnp.full((C, T), -0.5, jnp.float32)
    max_control = jnp.full((C, T), 0.5, jnp.float32)

    ref_cost, ref_w = _reference_scores(trajectory, goal_pose, _TEMPERATURE, _CRITIC_WEIGHT)
    ref_ctrl = _reference_control(ref_w, noise, current_control, min_control, max_control)

    # 1) Time-major path: last-step slab DMA'd straight from HBM by the BlockSpec.
    traj_tm = jnp.transpose(trajectory, (2, 1, 0))        # [T+1, 3, K]
    cost_tm, w_tm = mppi_rollout_scores_time_major(traj_tm, goal_pose)
    jax.block_until_ready(w_tm)
    assert cost_tm.shape == (K,) and w_tm.shape == (K,)
    assert jnp.allclose(cost_tm, ref_cost, atol=1e-4, rtol=1e-4)
    assert jnp.allclose(w_tm, ref_w, atol=1e-4, rtol=1e-4)

    # 2) Module-native [K, 3, T] path.
    cost_n, w_n = mppi_rollout_scores(trajectory, goal_pose)
    jax.block_until_ready(w_n)
    assert jnp.allclose(cost_n, ref_cost, atol=1e-4, rtol=1e-4)
    assert jnp.allclose(w_n, ref_w, atol=1e-4, rtol=1e-4)

    # 3) Full control update (fused kernel weights + jnp averaging + clamp).
    ctrl = mppi_update_control(traj_tm, goal_pose, noise, current_control,
                               min_control, max_control)
    jax.block_until_ready(ctrl)
    assert ctrl.shape == (C, T)
    assert jnp.allclose(ctrl, ref_ctrl, atol=1e-4, rtol=1e-4)

    # 4) K not a multiple of 128 exercises the in-kernel lane mask + masked store.
    K2 = 100
    traj2 = jax.random.normal(jax.random.PRNGKey(1), (K2, S, T + 1), dtype=jnp.float32) * 2.0
    cost2, w2 = mppi_rollout_scores(traj2, goal_pose)
    ref_cost2, ref_w2 = _reference_scores(traj2, goal_pose, _TEMPERATURE, _CRITIC_WEIGHT)
    jax.block_until_ready(w2)
    assert cost2.shape == (K2,) and w2.shape == (K2,)
    assert jnp.allclose(cost2, ref_cost2, atol=1e-4, rtol=1e-4)
    assert jnp.allclose(w2, ref_w2, atol=1e-4, rtol=1e-4)

    print("KERNEL_OK")
</pallas_src>

<mosaic_0001>
module attributes {stable_mosaic.version = 11 : i64} {
  func.func @kernel(%arg0: i32, %arg1: memref<1x3x256xf32, #tpu.memory_space<vmem>>, %arg2: memref<2xf32, #tpu.memory_space<smem>>, %arg3: memref<1x256xf32, #tpu.memory_space<vmem>>, %arg4: memref<1x256xf32, #tpu.memory_space<vmem>>) attributes {dimension_semantics = [#tpu.dimension_semantics<arbitrary>], iteration_bounds = array<i64: 1>, scalar_prefetch = 0 : i64, scratch_operands = 0 : i64, tpu.core_type = #tpu.core_type<tc>, window_params = [{transform_indices = @transform_0, window_bounds = array<i64: 1, 3, 256>}, {transform_indices = @transform_1, window_bounds = array<i64: 2>}, {pipeline_mode = #tpu.pipeline_mode<synchronous>, transform_indices = @transform_2, window_bounds = array<i64: 1, 256>}, {pipeline_mode = #tpu.pipeline_mode<synchronous>, transform_indices = @transform_3, window_bounds = array<i64: 1, 256>}]} {
    %c0 = arith.constant 0 : index
    %c0_0 = arith.constant 0 : index
    %c0_1 = arith.constant 0 : index
    %0 = vector.load %arg1[%c0, %c0_0, %c0_1] : memref<1x3x256xf32, #tpu.memory_space<vmem>>, vector<1x3x256xf32>
    %1 = vector.shape_cast %0 : vector<1x3x256xf32> to vector<3x256xf32>
    %c0_2 = arith.constant 0 : index
    %2 = memref.load %arg2[%c0_2] : memref<2xf32, #tpu.memory_space<smem>>
    %c1 = arith.constant 1 : index
    %3 = memref.load %arg2[%c1] : memref<2xf32, #tpu.memory_space<smem>>
    %4 = vector.extract_strided_slice %1 {offsets = [0, 0], sizes = [1, 256], strides = [1, 1]} : vector<3x256xf32> to vector<1x256xf32>
    %5 = vector.broadcast %2 : f32 to vector<1x256xf32>
    %6 = arith.subf %4, %5 : vector<1x256xf32>
    %7 = vector.extract_strided_slice %1 {offsets = [1, 0], sizes = [1, 256], strides = [1, 1]} : vector<3x256xf32> to vector<1x256xf32>
    %8 = vector.broadcast %3 : f32 to vector<1x256xf32>
    %9 = arith.subf %7, %8 : vector<1x256xf32>
    %10 = vector.extract_strided_slice %1 {offsets = [2, 0], sizes = [1, 256], strides = [1, 1]} : vector<3x256xf32> to vector<1x256xf32>
    %11 = math.absf %6 : vector<1x256xf32>
    %12 = math.absf %9 : vector<1x256xf32>
    %13 = arith.maximumf %11, %12 : vector<1x256xf32>
    %14 = arith.minimumf %11, %12 : vector<1x256xf32>
    %cst = arith.constant 0.000000e+00 : f32
    %15 = vector.broadcast %cst : f32 to vector<1x256xf32>
    %16 = arith.cmpf ogt, %13, %15 : vector<1x256xf32>
    %cst_3 = arith.constant 1.000000e+00 : f32
    %17 = vector.broadcast %cst_3 : f32 to vector<1x256xf32>
    %18 = arith.select %16, %13, %17 : vector<1x256xi1>, vector<1x256xf32>
    %19 = arith.divf %14, %18 : vector<1x256xf32>
    %cst_4 = arith.constant 0.414213568 : f32
    %20 = vector.broadcast %cst_4 : f32 to vector<1x256xf32>
    %21 = arith.cmpf ogt, %19, %20 : vector<1x256xf32>
    %cst_5 = arith.constant 1.000000e+00 : f32
    %22 = vector.broadcast %cst_5 : f32 to vector<1x256xf32>
    %23 = arith.subf %19, %22 : vector<1x256xf32>
    %cst_6 = arith.constant 1.000000e+00 : f32
    %24 = vector.broadcast %cst_6 : f32 to vector<1x256xf32>
    %25 = arith.addf %19, %24 : vector<1x256xf32>
    %26 = arith.divf %23, %25 : vector<1x256xf32>
    %27 = arith.select %21, %26, %19 : vector<1x256xi1>, vector<1x256xf32>
    %28 = arith.mulf %27, %27 : vector<1x256xf32>
    %cst_7 = arith.constant 0.0805374458 : f32
    %29 = vector.broadcast %cst_7 : f32 to vector<1x256xf32>
    %30 = arith.mulf %29, %28 : vector<1x256xf32>
    %cst_8 = arith.constant 0.138776854 : f32
    %31 = vector.broadcast %cst_8 : f32 to vector<1x256xf32>
    %32 = arith.subf %30, %31 : vector<1x256xf32>
    %33 = arith.mulf %32, %28 : vector<1x256xf32>
    %cst_9 = arith.constant 0.199777111 : f32
    %34 = vector.broadcast %cst_9 : f32 to vector<1x256xf32>
    %35 = arith.addf %33, %34 : vector<1x256xf32>
    %36 = arith.mulf %35, %28 : vector<1x256xf32>
    %cst_10 = arith.constant 0.333329499 : f32
    %37 = vector.broadcast %cst_10 : f32 to vector<1x256xf32>
    %38 = arith.subf %36, %37 : vector<1x256xf32>
    %39 = arith.mulf %38, %28 : vector<1x256xf32>
    %40 = arith.mulf %39, %27 : vector<1x256xf32>
    %41 = arith.addf %40, %27 : vector<1x256xf32>
    %cst_11 = arith.constant 0.785398185 : f32
    %42 = vector.broadcast %cst_11 : f32 to vector<1x256xf32>
    %43 = arith.addf %41, %42 : vector<1x256xf32>
    %44 = arith.select %21, %43, %41 : vector<1x256xi1>, vector<1x256xf32>
    %45 = arith.cmpf ogt, %12, %11 : vector<1x256xf32>
    %cst_12 = arith.constant 1.57079637 : f32
    %46 = vector.broadcast %cst_12 : f32 to vector<1x256xf32>
    %47 = arith.subf %46, %44 : vector<1x256xf32>
    %48 = arith.select %45, %47, %44 : vector<1x256xi1>, vector<1x256xf32>
    %cst_13 = arith.constant 0.000000e+00 : f32
    %49 = vector.broadcast %cst_13 : f32 to vector<1x256xf32>
    %50 = arith.cmpf olt, %6, %49 : vector<1x256xf32>
    %cst_14 = arith.constant 3.14159274 : f32
    %51 = vector.broadcast %cst_14 : f32 to vector<1x256xf32>
    %52 = arith.subf %51, %48 : vector<1x256xf32>
    %53 = arith.select %50, %52, %48 : vector<1x256xi1>, vector<1x256xf32>
    %cst_15 = arith.constant 0.000000e+00 : f32
    %54 = vector.broadcast %cst_15 : f32 to vector<1x256xf32>
    %55 = arith.cmpf olt, %9, %54 : vector<1x256xf32>
    %cst_16 = arith.constant 0.000000e+00 : f32
    %56 = vector.broadcast %cst_16 : f32 to vector<1x256xf32>
    %57 = arith.subf %56, %53 : vector<1x256xf32>
    %58 = arith.select %55, %57, %53 : vector<1x256xi1>, vector<1x256xf32>
    %59 = arith.subf %58, %10 : vector<1x256xf32>
    %60 = vector.shape_cast %59 : vector<1x256xf32> to vector<1x1x256xf32>
    %cst_17 = arith.constant dense<0x7F800000> : vector<1xf32>
    %61 = vector.multi_reduction <minimumf>, %60, %cst_17 [1, 2] : vector<1x1x256xf32> to vector<1xf32>
    %62 = vector.shape_cast %61 : vector<1xf32> to vector<1x1x1xf32>
    %63 = vector.extract %62[0, 0, 0] : f32 from vector<1x1x1xf32>
    %64 = vector.shape_cast %59 : vector<1x256xf32> to vector<1x1x256xf32>
    %cst_18 = arith.constant dense<0xFF800000> : vector<1xf32>
    %65 = vector.multi_reduction <maximumf>, %64, %cst_18 [1, 2] : vector<1x1x256xf32> to vector<1xf32>
    %66 = vector.shape_cast %65 : vector<1xf32> to vector<1x1x1xf32>
    %67 = vector.extract %66[0, 0, 0] : f32 from vector<1x1x1xf32>
    %68 = arith.subf %67, %63 : f32
    %cst_19 = arith.constant 5.000000e-01 : f32
    %69 = arith.divf %cst_19, %68 : f32
    %70 = vector.broadcast %63 : f32 to vector<1x256xf32>
    %71 = arith.subf %59, %70 : vector<1x256xf32>
    %72 = vector.broadcast %69 : f32 to vector<1x256xf32>
    %73 = arith.mulf %71, %72 : vector<1x256xf32>
    %c0_20 = arith.constant 0 : index
    %c0_21 = arith.constant 0 : index
    %74 = vector.load %arg3[%c0_20, %c0_21] : memref<1x256xf32, #tpu.memory_space<vmem>>, vector<1x256xf32>
    tpu.vector_store %arg3[%c0_20, %c0_21], %73 {strides = array<i32>} : memref<1x256xf32, #tpu.memory_space<vmem>>, vector<1x256xf32>,
    %75 = vector.shape_cast %73 : vector<1x256xf32> to vector<1x1x256xf32>
    %cst_22 = arith.constant dense<0x7F800000> : vector<1xf32>
    %76 = vector.multi_reduction <minimumf>, %75, %cst_22 [1, 2] : vector<1x1x256xf32> to vector<1xf32>
    %77 = vector.shape_cast %76 : vector<1xf32> to vector<1x1x1xf32>
    %78 = vector.extract %77[0, 0, 0] : f32 from vector<1x1x1xf32>
    %79 = vector.broadcast %78 : f32 to vector<1x256xf32>
    %80 = arith.subf %79, %73 : vector<1x256xf32>
    %cst_23 = arith.constant 1.000000e+01 : f32
    %81 = vector.broadcast %cst_23 : f32 to vector<1x256xf32>
    %82 = arith.mulf %80, %81 : vector<1x256xf32>
    %83 = math.exp %82 : vector<1x256xf32>
    %c0_24 = arith.constant 0 : index
    %c0_25 = arith.constant 0 : index
    %84 = vector.load %arg4[%c0_24, %c0_25] : memref<1x256xf32, #tpu.memory_space<vmem>>, vector<1x256xf32>
    tpu.vector_store %arg4[%c0_24, %c0_25], %83 {strides = array<i32>} : memref<1x256xf32, #tpu.memory_space<vmem>>, vector<1x256xf32>,
    return
  }
  func.func @transform_0(%arg0: i32) -> (i32, i32, i32) {
    %c8_i32 = arith.constant 8 : i32
    %c0_i32 = arith.constant 0 : i32
    %c0_i32_0 = arith.constant 0 : i32
    %c0_i32_1 = arith.constant 0 : i32
    return %c8_i32, %c0_i32, %c0_i32_0 : i32, i32, i32
  }
  func.func @transform_1(%arg0: i32) -> i32 {
    %c0_i32 = arith.constant 0 : i32
    %c0_i32_0 = arith.constant 0 : i32
    return %c0_i32 : i32
  }
  func.func @transform_2(%arg0: i32) -> (i32, i32) {
    %c0_i32 = arith.constant 0 : i32
    %c0_i32_0 = arith.constant 0 : i32
    %c0_i32_1 = arith.constant 0 : i32
    return %c0_i32, %c0_i32_0 : i32, i32
  }
  func.func @transform_3(%arg0: i32) -> (i32, i32) {
    %c0_i32 = arith.constant 0 : i32
    %c0_i32_0 = arith.constant 0 : i32
    %c0_i32_1 = arith.constant 0 : i32
    return %c0_i32, %c0_i32_0 : i32, i32
  }
}

</mosaic_0001>

<bundles_post_ra>
// kernel: tpu_custom_call.1
= control target key start
LH: loop header
LB: loop body
LE: loop exit
PB: predicated region body
PF: predicated region fallthrough
CT: control target
= control target key end

     0   :  { %9 = vsyncpa [#allocation3], 0  ;;  %s451_s0 = inlined_call_operand.hbm [shape: f32[9,3,256], index: 0, kind: input, shape index: {}]   ;;  %s452_s1 = inlined_call_operand.vmem [shape: f32[2], index: 1, kind: input, shape index: {}]   ;;  %s453_s2 = inlined_call_operand.hbm [shape: f32[1,256], index: 2, kind: output, shape index: {0}]   ;;  %s454_s3 = inlined_call_operand.hbm [shape: f32[1,256], index: 3, kind: output, shape index: {1}]  }
   0x1   :  { %10 = vsyncpa [#allocation5], 0 }
   0x2   :  { %11 = vsyncpa [#allocation4], 0 }
   0x3   :  { %12 = vsyncpa [#allocation9], 0  ;;  %s18_s14 = scalar_lea.hbm %s451_s0, 1024  ;;  %s374_s15 = smov [#allocation2]  }
   0x4   :  { %s20_s16 = sshll.u32 %s374_s15, 4  ;;  %s30_s19 = sshll.u32 %s452_s1, 4  ;;  %s21_s16 = int_to_ptr.vmem [resolvable:$true] %s20_s16  ;;  %s31_s19 = int_to_ptr.vmem [resolvable:$true] %s30_s19 }
   0x5   :  { %s309_s22 = scalar_lea.hbm %s451_s0, 1152  ;;  %p288_p1 = scmp.lt.u32.totalorder %s18_s14, %s451_s0 }
   0x6   :  { %p286_p0 = scmp.ne.s32.totalorder %s18_s14, %s309_s22  ;;  %p289_p2 = scmp.lt.u32.totalorder %s309_s22, %s309_s22 }
   0x7   :  { %p291_p4 = scmp.lt.u32.totalorder %s309_s22, %s18_s14 }
   0x8   :  { %p290_p3 = por %p289_p2, %p288_p1 }
   0xa   :  { %p292_p5 = por %p291_p4, %p290_p3 }
   0xc   :  { %p293_p6 = pnand %p292_p5, %p286_p0 }
   0xe   :  { %296 = shalt.err (!%p293_p6)
}
   0xf   :  { %s297_s25 = scalar_lea.vmem %s21_s16, 128  ;;  %p302_p8 = scmp.lt.s32.totalorder %s21_s16, %s21_s16 }
  0x10   :  { %p298_p7 = scmp.ne.s32.totalorder %s21_s16, %s297_s25  ;;  %p303_p9 = scmp.lt.s32.totalorder %s297_s25, %s297_s25 }
  0x12   :  { %p304_p10 = por %p303_p9, %p302_p8 }
  0x14   :  { %p305_p11 = pnand %p304_p10, %p298_p7 }
  0x16   :  { %308 = shalt.err (!%p305_p11)
}
  0x17   :  { %23 = dma.hbm_to_vmem [thread:$0]  %s18_s14, 128, %s21_s16, [#allocation3]  }
  0x18   :  { %s310_s1 = scalar_lea.vmem %s31_s19, 16  ;;  %p315_p13 = scmp.lt.s32.totalorder %s31_s19, %s31_s19 }
  0x19   :  { %p311_p12 = scmp.ne.s32.totalorder %s31_s19, %s310_s1  ;;  %p316_p1 = scmp.lt.s32.totalorder %s310_s1, %s310_s1 }
  0x1b   :  { %p317_p2 = por %p316_p1, %p315_p13 }
  0x1d   :  { %p318_p3 = pnand %p317_p2, %p311_p12 }
  0x1f   :  { %321 = shalt.err (!%p318_p3)
}
  0x20   :  { %s375_s0 = smov [#allocation6]  }
  0x21   :  { %33 = dma.vmem_to_smem %s31_s19, 16, %s375_s0, [#allocation5]  }
  0x22   :  { %366 = dma.done.wait [#allocation3], 128  }
  0x23   :  { %367 = vsyncadd [#allocation3], 4294967168 }
  0x24   :  { %368 = dma.done.wait [#allocation5], 16  }
  0x25   :  { %369 = vsyncadd [#allocation5], 4294967280 }
  0x26   :  { %40 = sfence }
  0x27   :  { %s42_s26 = sld [smem:[#allocation6]]  ;;  %s257_s27 = sld [smem:[#allocation6 + $0x1]]  ;;  %v41_v0 = vld [vmem:[#allocation2] sm:$0x77]  ;;  %v116_v38 = vlaneseq  ;;  %vm126_vm5 = vcmask 1041409  }
  0x28   :  { %v263_v44 = vrot.slane %v41_v0, 9  ;;  %s377_s6 = smov [#allocation7]  }
  0x29   :  { %v117_v41 = vshrl.u32 %v116_v38, 7  ;;  %vm419_vm6 = vcmp.lt.s32.totalorder %v116_v38, 256  ;;  %s233_s7 = sshll.u32 %s377_s6, 4  ;;  %s234_s7 = int_to_ptr.vmem [resolvable:$true] %s233_s7 }
  0x2a   :  { %s322_s8 = scalar_lea.vmem %s234_s7, 32  ;;  %p327_p4 = scmp.lt.s32.totalorder %s234_s7, %s234_s7 }
  0x2b   :  { %v118_v46 = vsub.s32 1, %v117_v41  ;;  %v122_v47 = vsub.s32 5, %v117_v41  ;;  %p323_p0 = scmp.ne.s32.totalorder %s234_s7, %s322_s8  ;;  %p328_p5 = scmp.lt.s32.totalorder %s322_s8, %s322_s8 }
  0x2d   :  { %v44_v1 = vstv %s42_s26  ;;  %v46_v2 = vstv %s257_s27  ;;  %p329_p6 = por %p328_p5, %p327_p4 }
  0x2e   :  { %v45_v3 = vsub.f32 %v41_v0, %v44_v1  ;;  %v47_v4 = vsub.f32 %v41_v0, %v46_v2 }
  0x2f   :  { %p330_p7 = pnand %p329_p6, %p323_p0 }
  0x30   :  { %v49_v5 = vand.u32 2147483647, %v47_v4  ;;  %v48_v6 = vand.u32 2147483647, %v45_v3  ;;  %vm90_vm3 = vcmp.lt.f32.partialorder %v45_v3, 0.0  ;;  %vm101_vm4 = vcmp.lt.f32.partialorder %v47_v4, 0.0 }
  0x32   :  { %v51_v7 = vrot.slane %v49_v5, 5  ;;  %v79_v30 = vrot.slane %v48_v6, 7 }
  0x34   :  { %v52_v8 = vrot.slane %v51_v7, 4  ;;  %vm81_vm2 = vcmp.gt.f32.partialorder %v49_v5, %v79_v30 }
  0x36   :  { %v54_v9 = vmax.f32 %v48_v6, %v52_v8  ;;  %v55_v11 = vmin.f32 %v48_v6, %v52_v8 }
  0x38   :  { %vm56_vm0 = vcmp.gt.f32.partialorder %v54_v9, 0.0 }
  0x39   :  { %v57_v10 = vsel %vm56_vm0, %v54_v9, 1.0 }
  0x3a   :  { %277 = vrcp.f32 %v57_v10  ;;  %v376_v10 = vmov 1966171168  }
  0x44   :  { %v278_v12 = vpop.eup %277 }
  0x45   :  { %v59_v13 = vmul.f32 %v278_v12, %v55_v11  ;;  %v162_v11 = vunpack.c.l.s4 %v376_v10 }
  0x47   :  { %v62_v14 = vadd.f32 1.0, %v59_v13  ;;  %v258_v15 = vadd.f32 -1.0, %v59_v13  ;;  %vm60_vm1 = vcmp.gt.f32.partialorder %v59_v13, 0.41421357  ;;  %v163_v12 = vunpack.c.0.s8 %v162_v11 }
  0x49   :  { %279 = vrcp.f32 %v62_v14 }
  0x53   :  { %v280_v16 = vpop.eup %279 }
  0x54   :  { %v64_v17 = vmul.f32 %v280_v16, %v258_v15  ;;  %v166_v15 = vsub.s32 %v163_v12, %v117_v41 }
  0x56   :  { %v65_v18 = vsel %vm60_vm1, %v64_v17, %v59_v13 }
  0x57   :  { %v66_v19 = vmul.f32 %v65_v18, %v65_v18 }
  0x59   :  { %v67_v20 = vmul.f32 0.080537446, %v66_v19 }
  0x5b   :  { %v259_v21 = vadd.f32 -0.13877685, %v67_v20 }
  0x5d   :  { %v69_v22 = vmul.f32 %v259_v21, %v66_v19 }
  0x5f   :  { %v70_v23 = vadd.f32 0.19977711, %v69_v22 }
  0x61   :  { %v71_v24 = vmul.f32 %v70_v23, %v66_v19 }
  0x63   :  { %v260_v25 = vadd.f32 -0.3333295, %v71_v24 }
  0x65   :  { %v73_v26 = vmul.f32 %v260_v25, %v66_v19 }
  0x67   :  { %v74_v27 = vmul.f32 %v73_v26, %v65_v18 }
  0x69   :  { %v75_v28 = vadd.f32 %v74_v27, %v65_v18 }
  0x6b   :  { %v76_v29 = vadd.f32 0.7853982, %v75_v28 }
  0x6d   :  { %v77_v31 = vsel %vm60_vm1, %v76_v29, %v75_v28 }
  0x6e   :  { %v82_v32 = vsub.f32 1.5707964, %v77_v31  ;;  %v87_v33 = vrot.slane %v77_v31, 7 }
  0x70   :  { %v84_v34 = vrot.slane %v82_v32, 7 }
  0x72   :  { %v89_v35 = vsel %vm81_vm2, %v84_v34, %v87_v33 }
  0x73   :  { %v91_v36 = vsub.f32 3.1415927, %v89_v35  ;;  %v262_v37 = vrot.slane %v89_v35, 9 }
  0x75   :  { %v261_v39 = vrot.slane %v91_v36, 9 }
  0x77   :  { %v100_v40 = vsel %vm90_vm3, %v261_v39, %v262_v37 }
  0x78   :  { %v102_v42 = vsub.f32 0.0, %v100_v40  ;;  %v107_v43 = vrot.slane %v100_v40, 7 }
  0x7a   :  { %v104_v45 = vrot.slane %v102_v42, 7 }
  0x7c   :  { %v109_v48 = vsel %vm101_vm4, %v104_v45, %v107_v43 }
  0x7d   :  { %v114_v49 = vsub.f32 %v109_v48, %v263_v44 }
  0x7f   :  { %v119_v50 = vrot.slane %v114_v49, %v118_v46  ;;  %v123_v51 = vrot.slane %v114_v49, %v122_v47 }
  0x81   :  { %v127_v52 = vsel %vm126_vm5, %v119_v50, inf  ;;  %v128_v53 = vsel %vm126_vm5, %v123_v51, inf  ;;  %v139_v54 = vsel %vm126_vm5, %v119_v50, -inf  ;;  %v140_v55 = vsel %vm126_vm5, %v123_v51, -inf }
  0x82   :  { %v129_v56 = vmin.f32 %v127_v52, %v128_v53  ;;  %v141_v57 = vmax.f32 %v139_v54, %v140_v55 }
  0x84   :  { %130 = vmin.xlane.f32.xlu0 %v129_v56 }
  0x88   :  { %142 = vmax.xlane.f32.xlu0 %v141_v57 }
 0x111   :  { %v131_v58 = vpop.xlane.xlu0 %130 }
 0x112   :  { %v132_v59 = vrot.slane %v131_v58, 4 }
 0x114   :  { %v133_v60 = vmin.f32 %v131_v58, %v132_v59 }
 0x115   :  { %v143_v61 = vpop.xlane.xlu0 %142 }
 0x116   :  { %v134_v62 = vrot.slane %v133_v60, 2  ;;  %v144_v63 = vrot.slane %v143_v61, 4 }
 0x118   :  { %v145_v0 = vmax.f32 %v143_v61, %v144_v63  ;;  %v135_v1 = vmin.f32 %v133_v60, %v134_v62 }
 0x11a   :  { %v146_v2 = vrot.slane %v145_v0, 2  ;;  %v136_v3 = vrot.slane %v135_v1, 1 }
 0x11c   :  { %v147_v4 = vmax.f32 %v145_v0, %v146_v2  ;;  %v137_v5 = vmin.f32 %v135_v1, %v136_v3 }
 0x11e   :  { %264 = vpush %v137_v5  ;;  %v148_v6 = vrot.slane %v147_v4, 1 }
 0x120   :  { %v149_v7 = vmax.f32 %v147_v4, %v148_v6 }
 0x122   :  { %266 = vpush %v149_v7 }
 0x14f   :  { %s265_s28 = spop %264 }
 0x150   :  { %v156_v13 = vstv %s265_s28 }
 0x151   :  { %v157_v14 = vsub.f32 %v114_v49, %v156_v13 }
 0x153   :  { %s267_s29 = spop %266 }
 0x154   :  { %s151_s30 = ssub.f32 %s267_s29, %s265_s28 }
 0x156   :  { %v152_v8 = vstv %s151_s30 }
 0x157   :  { %281 = vrcp.f32 %v152_v8 }
 0x161   :  { %v282_v9 = vpop.eup %281 }
 0x162   :  { %268 = vpush %v282_v9 }
 0x193   :  { %s269_s4 = spop %268 }
 0x194   :  { %s155_s5 = smul.f32 0.5, %s269_s4 }
 0x196   :  { %v158_v16 = vstv %s155_s5 }
 0x197   :  { %v159_v17 = vmul.f32 %v158_v16, %v157_v14 }
 0x199   :  { %v185_v18 = vrot.slane %v159_v17, %v118_v46  ;;  %v189_v19 = vrot.slane %v159_v17, %v122_v47  ;;  %v167_v20 = vrot.slane %v159_v17, %v166_v15 }
 0x19b   :  { %v192_v21 = vsel %vm126_vm5, %v185_v18, inf  ;;  %v193_v22 = vsel %vm126_vm5, %v189_v19, inf  ;;  %v168_v23 = vcombine.high %v167_v20, %v167_v20 }
 0x19c   :  { %v194_v24 = vmin.f32 %v192_v21, %v193_v22 }
 0x19d   :  { %v175_v26 = vrot.slane %v168_v23, %v166_v15 }
 0x19e   :  { %195 = vmin.xlane.f32.xlu1 %v194_v24 }
 0x19f   :  { %181 = vst.msk [vmem:[#allocation7] sm:$0x3] %vm419_vm6, %v175_v26 }
 0x1a0   :  { %333 = shalt.err (!%p330_p7)
}
 0x1a1   :  { %s334_s11 = scalar_lea.hbm %s453_s2, 32 }
 0x1a2   :  { %p335_p8 = scmp.ne.s32.totalorder %s453_s2, %s334_s11  ;;  %p338_p9 = scmp.lt.u32.totalorder %s334_s11, %s453_s2 }
 0x1a4   :  { %p340_p10 = pnand %p338_p9, %p335_p8 }
 0x1a6   :  { %343 = shalt.err (!%p340_p10)
}
 0x1a7   :  { %236 = dma.vmem_to_hbm [thread:$0]  %s234_s7, 32, %s453_s2, [#allocation4]  }
 0x1a8   :  { %s378_s19 = smov [#allocation8]  }
 0x1a9   :  { %s243_s20 = sshll.u32 %s378_s19, 4  ;;  %s244_s20 = int_to_ptr.vmem [resolvable:$true] %s243_s20 }
 0x1aa   :  { %s344_s2 = scalar_lea.vmem %s244_s20, 32  ;;  %p349_p12 = scmp.lt.s32.totalorder %s244_s20, %s244_s20 }
 0x1ab   :  { %p345_p11 = scmp.ne.s32.totalorder %s244_s20, %s344_s2  ;;  %p350_p13 = scmp.lt.s32.totalorder %s344_s2, %s344_s2 }
 0x1ad   :  { %p351_p1 = por %p350_p13, %p349_p12 }
 0x1af   :  { %p352_p2 = pnand %p351_p1, %p345_p11 }
 0x22b   :  { %v196_v27 = vpop.xlane.xlu1 %195 }
 0x22c   :  { %v197_v28 = vrot.slane %v196_v27, 4 }
 0x22e   :  { %v198_v29 = vmin.f32 %v196_v27, %v197_v28 }
 0x230   :  { %v199_v30 = vrot.slane %v198_v29, 2 }
 0x232   :  { %v200_v31 = vmin.f32 %v198_v29, %v199_v30 }
 0x234   :  { %v201_v32 = vrot.slane %v200_v31, 1 }
 0x236   :  { %v202_v33 = vmin.f32 %v200_v31, %v201_v32 }
 0x238   :  { %270 = vpush %v202_v33 }
 0x269   :  { %s271_s18 = spop %270 }
 0x26a   :  { %v204_v34 = vstv %s271_s18 }
 0x26b   :  { %v205_v35 = vsub.f32 %v204_v34, %v159_v17 }
 0x26d   :  { %v206_v36 = vmul.f32 10.0, %v205_v35 }
 0x26f   :  { %v207_v37 = vmul.f32 1.442695, %v206_v36 }
 0x271   :  { %283 = vpow2.f32 %v207_v37 }
 0x27b   :  { %v284_v38 = vpop.eup %283 }
 0x27c   :  { %v216_v39 = vrot.slane %v284_v38, %v166_v15 }
 0x27e   :  { %v217_v40 = vcombine.high %v216_v39, %v216_v39 }
 0x280   :  { %v224_v41 = vrot.slane %v217_v40, %v166_v15 }
 0x282   :  { %226 = vst.msk [vmem:[#allocation8] sm:$0x3] %vm419_vm6, %v224_v41 }
 0x283   :  { %355 = shalt.err (!%p352_p2)
}
 0x284   :  { %s356_s23 = scalar_lea.hbm %s454_s3, 32 }
 0x285   :  { %p357_p3 = scmp.ne.s32.totalorder %s454_s3, %s356_s23  ;;  %p360_p0 = scmp.lt.u32.totalorder %s356_s23, %s454_s3 }
 0x287   :  { %p362_p4 = pnand %p360_p0, %p357_p3 }
 0x289   :  { %365 = shalt.err (!%p362_p4)
}
 0x28a   :  { %246 = dma.vmem_to_hbm [thread:$0]  %s244_s20, 32, %s454_s3, [#allocation9]  }
 0x28b   :  { %370 = dma.done.wait [#allocation4], 32  }
 0x28c   :  { %371 = vsyncadd [#allocation4], 4294967264 }
 0x28d   :  { %372 = dma.done.wait [#allocation9], 32  }
 0x28e   :  { %373 = vsyncadd [#allocation9], 4294967264 }
 0x28f   :  { %253 = vsyncpa [#allocation3], 1 }
 0x290   :  { %254 = vsyncpa [#allocation4], 1 }
 0x291   :  { %255 = vsyncpa [#allocation9], 1 }
 0x292   :  { %256 = vsyncpa [#allocation5], 1 }

</bundles_post_ra>
